<compile_context>
chip_gen: v6e
topology: v6e:2x2x1
jax: 0.10.0
libtpu: 0.0.40
codegen_flags: <defaults>
</compile_context>

<pallas_src>
import math

import jax
import jax.numpy as jnp
from jax import lax
from jax.experimental import pallas as pl
from jax.experimental.pallas import tpu as pltpu


_VMEM_LIMIT = 48 * 1024 * 1024  # portable: v5e/v6e (128 MiB) and v7x (64 MiB)


def _pick_tile(n, t_max, unit):
    """Largest divisor of n that is a multiple of `unit` and <= t_max.

    Falls back to n (one full block) when no such divisor exists, so no padded
    HBM copy of the activations is ever materialized.
    """
    best = None
    d = unit
    lim = min(n, t_max)
    while d <= lim:
        if n % d == 0:
            best = d
        d += unit
    return best if best is not None else n


# ---------------------------------------------------------------------------
# Linear:  y = x @ W + b   (rows tiled; columns tiled only for very wide W)
# ---------------------------------------------------------------------------
def _linear_kernel(x_ref, w_ref, b_ref, o_ref):
    # Native-dtype operands on the MXU, f32 accumulation, single cast at store.
    acc = jnp.dot(x_ref[...], w_ref[...], preferred_element_type=jnp.float32)
    o_ref[...] = (acc + b_ref[...].astype(jnp.float32)).astype(o_ref.dtype)


def _linear(x2d, w, b, *, tm_max=512):
    n, d_in = x2d.shape
    d_out = w.shape[1]

    tm = _pick_tile(n, tm_max, 8)
    # Column tiling keeps the resident weight block small enough for v7x's
    # 64 MiB VMEM even at large E (otherwise a full (E,E) f32 weight won't fit).
    tn_budget = (8 * 1024 * 1024) // max(d_in * x2d.dtype.itemsize, 1)
    tn = _pick_tile(d_out, max(128, min(2048, tn_budget)), 128)
    nm, nn = n // tm, d_out // tn

    return pl.pallas_call(
        _linear_kernel,
        out_shape=jax.ShapeDtypeStruct((n, d_out), x2d.dtype),
        grid_spec=pltpu.PrefetchScalarGridSpec(
            num_scalar_prefetch=0,
            # Column tiles outermost, row tiles innermost: each weight column
            # block is fetched once and stays VMEM-resident while rows stream.
            grid=(nn, nm),
            in_specs=[
                pl.BlockSpec((tm, d_in), lambda j, i: (i, 0)),   # activations
                pl.BlockSpec((d_in, tn), lambda j, i: (0, j)),   # weight
                pl.BlockSpec((1, tn), lambda j, i: (0, j)),      # bias
            ],
            out_specs=pl.BlockSpec((tm, tn), lambda j, i: (i, j)),
        ),
        compiler_params=pltpu.CompilerParams(
            dimension_semantics=("parallel", "parallel"),
            vmem_limit_bytes=_VMEM_LIMIT),
    )(x2d, w, b.reshape(1, d_out))


# ---------------------------------------------------------------------------
# Attention: grid (B, q-tiles, head-blocks); q/k/v read in packed (B, L, E)
# layout via per-head-block column index maps (no HBM transposes).
# ---------------------------------------------------------------------------
def _heads_per_block(n_heads, d_head):
    """Heads batched per grid step so the lane (last) block dim is a multiple
    of 128 or the full embedding width."""
    if d_head % 128 == 0:
        return 1
    per = 128 // math.gcd(128, d_head)      # smallest Hb with Hb*Dh % 128 == 0
    if per <= n_heads and n_heads % per == 0:
        return per
    return n_heads                          # block covers all heads (last dim == E)


def _make_attn_kernel(heads_per_blk, d_head, scale, inv_heads, with_mask):
    def body(q_ref, k_ref, v_ref, m_ref, o_ref, w_ref, wacc_ref):
        h_step = pl.program_id(2)

        @pl.when(h_step == 0)
        def _():
            wacc_ref[...] = jnp.zeros_like(wacc_ref)

        # Fold 1/sqrt(Dh) into q: tq*Hb*Dh muls instead of tq*Sk per head.
        q = q_ref[0] * scale
        k = k_ref[0]
        v = v_ref[0]

        ctx_parts = []
        for h in range(heads_per_blk):      # static unroll over heads in block
            c0, c1 = h * d_head, (h + 1) * d_head
            s = lax.dot_general(q[:, c0:c1], k[:, c0:c1],
                                (((1,), (1,)), ((), ())),
                                preferred_element_type=jnp.float32)
            if with_mask:
                s = s + m_ref[0]            # (1, Sk) additive mask, broadcasts
            s = s - jnp.max(s, axis=-1, keepdims=True)
            p = jnp.exp(s)
            # Row-wise reciprocal + multiply instead of a full (tq, Sk) divide.
            inv = pl.reciprocal(jnp.sum(p, axis=-1, keepdims=True), approx=False)
            p = p * inv
            wacc_ref[...] += p              # raw head sum; 1/H applied once below
            ctx_parts.append(
                jnp.dot(p.astype(v.dtype), v[:, c0:c1],
                        preferred_element_type=jnp.float32))

        ctx = ctx_parts[0] if len(ctx_parts) == 1 else jnp.concatenate(ctx_parts, axis=-1)
        o_ref[0] = ctx.astype(o_ref.dtype)  # single lane-dense store per step

        @pl.when(h_step == pl.num_programs(2) - 1)
        def _():
            w_ref[0] = (wacc_ref[...] * inv_heads).astype(w_ref.dtype)

    if with_mask:
        return body

    def body_nomask(q_ref, k_ref, v_ref, o_ref, w_ref, wacc_ref):
        body(q_ref, k_ref, v_ref, None, o_ref, w_ref, wacc_ref)

    return body_nomask


def _qtile_map(off):
    def index_map(b, qi, h):
        return (b, qi, off + h)
    return index_map


def _kvtile_map(off):
    def index_map(b, qi, h):
        return (b, 0, off + h)
    return index_map


def _attention(q_arr, k_arr, v_arr, q_off, k_off, v_off, *, n_heads, heads_per_blk,
               seq_q, seq_k, d_head, mask_add, out_dtype, w_dtype, tq_max=256):
    B = q_arr.shape[0]
    n_hblk = n_heads // heads_per_blk
    cols = heads_per_blk * d_head

    # Query tiling: live VMEM scales with tq*Sk (f32 scratch + weights block),
    # keeping the kernel well under v7x's 64 MiB at long sequence lengths.
    cap = max(8, min(tq_max, ((3 * 1024 * 1024) // max(seq_k, 1)) // 8 * 8))
    tq = _pick_tile(seq_q, cap, 8)
    nq = seq_q // tq

    kernel = _make_attn_kernel(heads_per_blk, d_head, 1.0 / math.sqrt(d_head),
                               1.0 / n_heads, with_mask=mask_add is not None)

    in_specs = [
        pl.BlockSpec((1, tq, cols), _qtile_map(q_off)),
        pl.BlockSpec((1, seq_k, cols), _kvtile_map(k_off)),
        pl.BlockSpec((1, seq_k, cols), _kvtile_map(v_off)),
    ]
    args = [q_arr, k_arr, v_arr]
    if mask_add is not None:
        in_specs.append(pl.BlockSpec((1, 1, seq_k), lambda b, qi, h: (b, 0, 0)))
        args.append(mask_add)

    ctx, weights = pl.pallas_call(
        kernel,
        out_shape=(
            jax.ShapeDtypeStruct((B, seq_q, n_heads * d_head), out_dtype),
            jax.ShapeDtypeStruct((B, seq_q, seq_k), w_dtype),
        ),
        grid_spec=pltpu.PrefetchScalarGridSpec(
            num_scalar_prefetch=0,
            grid=(B, nq, n_hblk),           # head axis last (weights reduction)
            in_specs=in_specs,
            out_specs=[
                pl.BlockSpec((1, tq, cols), lambda b, qi, h: (b, qi, h)),
                pl.BlockSpec((1, tq, seq_k), lambda b, qi, h: (b, qi, 0)),
            ],
            scratch_shapes=[pltpu.VMEM((tq, seq_k), jnp.float32)],
        ),
        compiler_params=pltpu.CompilerParams(
            dimension_semantics=("parallel", "parallel", "arbitrary"),
            vmem_limit_bytes=_VMEM_LIMIT),
    )(*args)
    return ctx, weights


# ---------------------------------------------------------------------------
# Full MHA forward (returns attn_output, head-averaged attn_weights).
# ---------------------------------------------------------------------------
def mha_forward(query, key, value, params, key_padding_mask=None, *, nums_head):
    w_in, b_in = params["w_in"], params["b_in"]        # (E, 3E), (3E,)
    w_out, b_out = params["w_out"], params["b_out"]    # (E, E),  (E,)

    B, Lq, E = query.shape
    Sk = key.shape[1]
    H = nums_head
    assert E % H == 0
    Dh = E // H

    Hb = _heads_per_block(H, Dh)
    n_hblk = H // Hb
    # Can the attention kernel index head-blocks directly inside a packed
    # (B, L, k*E) projection output?  Requires a 128-aligned lane block.
    aligned = (Hb * Dh) % 128 == 0

    # --- in-projection: fused when tensors alias (activations read once) ---
    if (query is key) and (key is value):
        qkv2 = _linear(query.reshape(B * Lq, E), w_in, b_in)
        if aligned:
            qkv3 = qkv2.reshape(B, Lq, 3 * E)
            q_arr = k_arr = v_arr = qkv3
            q_off, k_off, v_off = 0, n_hblk, 2 * n_hblk
        else:
            q_arr = qkv2[:, :E].reshape(B, Lq, E)
            k_arr = qkv2[:, E:2 * E].reshape(B, Sk, E)
            v_arr = qkv2[:, 2 * E:].reshape(B, Sk, E)
            q_off = k_off = v_off = 0
    elif key is value:
        q_arr = _linear(query.reshape(B * Lq, E), w_in[:, :E], b_in[:E]).reshape(B, Lq, E)
        kv2 = _linear(key.reshape(B * Sk, E), w_in[:, E:], b_in[E:])
        q_off = 0
        if aligned:
            kv3 = kv2.reshape(B, Sk, 2 * E)
            k_arr = v_arr = kv3
            k_off, v_off = 0, n_hblk
        else:
            k_arr = kv2[:, :E].reshape(B, Sk, E)
            v_arr = kv2[:, E:].reshape(B, Sk, E)
            k_off = v_off = 0
    else:
        q_arr = _linear(query.reshape(B * Lq, E), w_in[:, :E], b_in[:E]).reshape(B, Lq, E)
        k_arr = _linear(key.reshape(B * Sk, E), w_in[:, E:2 * E], b_in[E:2 * E]).reshape(B, Sk, E)
        v_arr = _linear(value.reshape(B * Sk, E), w_in[:, 2 * E:], b_in[2 * E:]).reshape(B, Sk, E)
        q_off = k_off = v_off = 0

    # key_padding_mask (True = ignore) -> additive f32 mask; None -> no mask op.
    if key_padding_mask is None:
        mask_add = None
    else:
        mask_add = jnp.where(key_padding_mask, -1e30, 0.0
                             ).astype(jnp.float32).reshape(B, 1, Sk)

    ctx3, attn_weights = _attention(
        q_arr, k_arr, v_arr, q_off, k_off, v_off,
        n_heads=H, heads_per_blk=Hb, seq_q=Lq, seq_k=Sk, d_head=Dh,
        mask_add=mask_add, out_dtype=query.dtype, w_dtype=query.dtype)

    # --- out-projection (ctx3 is already the head-merged (B, Lq, E) layout) ---
    attn_output = _linear(ctx3.reshape(B * Lq, E), w_out, b_out).reshape(B, Lq, E)
    # Dropout inside nn.MultiheadAttention defaults to p=0.0 -> identity.
    return attn_output, attn_weights


# ---------------------------------------------------------------------------
# Pure-JAX reference (mirrors torch.nn.MultiheadAttention math).
# ---------------------------------------------------------------------------
def _reference(query, key, value, params, nums_head, key_padding_mask=None):
    w_in, b_in, w_out, b_out = (params["w_in"], params["b_in"],
                                params["w_out"], params["b_out"])
    B, Lq, E = query.shape
    Sk = key.shape[1]
    H = nums_head
    Dh = E // H

    q = query @ w_in[:, :E] + b_in[:E]
    k = key @ w_in[:, E:2 * E] + b_in[E:2 * E]
    v = value @ w_in[:, 2 * E:] + b_in[2 * E:]

    q = q.reshape(B, Lq, H, Dh).transpose(0, 2, 1, 3)
    k = k.reshape(B, Sk, H, Dh).transpose(0, 2, 1, 3)
    v = v.reshape(B, Sk, H, Dh).transpose(0, 2, 1, 3)

    scores = jnp.einsum('bhqd,bhkd->bhqk', q, k) / math.sqrt(Dh)
    if key_padding_mask is not None:
        scores = scores + jnp.where(key_padding_mask, -1e30, 0.0)[:, None, None, :]
    p = jax.nn.softmax(scores, axis=-1)
    ctx = jnp.einsum('bhqk,bhkd->bhqd', p, v)
    ctx = ctx.transpose(0, 2, 1, 3).reshape(B, Lq, E)
    out = ctx @ w_out + b_out
    return out, p.mean(axis=1)


if __name__ == "__main__":
    B, S, E, H = 2, 8, 32, 4          # small demo shapes (d_embed=32, 4 heads)
    root = jax.random.PRNGKey(0)
    k_q, k_k, k_v, k_win, k_bin, k_wout, k_bout = jax.random.split(root, 7)

    query = jax.random.normal(k_q, (B, S, E), dtype=jnp.float32)
    key_ = jax.random.normal(k_k, (B, S, E), dtype=jnp.float32)
    value = jax.random.normal(k_v, (B, S, E), dtype=jnp.float32)

    params = dict(
        w_in=jax.random.normal(k_win, (E, 3 * E), jnp.float32) / math.sqrt(E),
        b_in=jax.random.normal(k_bin, (3 * E,), jnp.float32) * 0.01,
        w_out=jax.random.normal(k_wout, (E, E), jnp.float32) / math.sqrt(E),
        b_out=jax.random.normal(k_bout, (E,), jnp.float32) * 0.01,
    )

    # 1) cross-attention path (distinct q/k/v), no mask -> unmasked kernel.
    out, w = mha_forward(query, key_, value, params,
                         key_padding_mask=None, nums_head=H)
    out = jax.block_until_ready(out)
    w = jax.block_until_ready(w)
    ref_out, ref_w = _reference(query, key_, value, params, H, None)
    assert out.shape == (B, S, E) and w.shape == (B, S, S)
    assert jnp.allclose(out, ref_out, atol=1e-4, rtol=1e-4)
    assert jnp.allclose(w, ref_w, atol=1e-4, rtol=1e-4)

    # 2) self-attention path (q is k is v) with a key_padding_mask
    #    -> fused (E,3E) in-projection + masked kernel variant.
    kpm = jnp.arange(S)[None, :] >= jnp.array([[S], [S - 3]])  # batch1: 3 keys masked
    out2, w2 = mha_forward(query, query, query, params,
                           key_padding_mask=kpm, nums_head=H)
    out2 = jax.block_until_ready(out2)
    w2 = jax.block_until_ready(w2)
    ref_out2, ref_w2 = _reference(query, query, query, params, H, kpm)
    assert jnp.allclose(out2, ref_out2, atol=1e-4, rtol=1e-4)
    assert jnp.allclose(w2, ref_w2, atol=1e-4, rtol=1e-4)
    # NOTE: fully-masked rows would give uniform 1/Sk weights here (finite
    # -1e30 mask) whereas torch yields NaN for that degenerate edge case.

    print("KERNEL_OK")
</pallas_src>

<mosaic_0001>
module attributes {stable_mosaic.version = 11 : i64} {
  func.func @_linear_kernel(%arg0: i32, %arg1: i32, %arg2: memref<16x32xf32, #tpu.memory_space<vmem>>, %arg3: memref<32x32xf32, #tpu.memory_space<vmem>>, %arg4: memref<1x32xf32, #tpu.memory_space<vmem>>, %arg5: memref<16x32xf32, #tpu.memory_space<vmem>>) attributes {dimension_semantics = [#tpu.dimension_semantics<parallel>, #tpu.dimension_semantics<parallel>], iteration_bounds = array<i64: 1, 1>, scalar_prefetch = 0 : i64, scratch_operands = 0 : i64, tpu.core_type = #tpu.core_type<tc>, window_params = [{transform_indices = @transform_0, window_bounds = array<i64: 16, 32>}, {transform_indices = @transform_1, window_bounds = array<i64: 32, 32>}, {transform_indices = @transform_2, window_bounds = array<i64: 1, 32>}, {transform_indices = @transform_3, window_bounds = array<i64: 16, 32>}]} {
    %c0 = arith.constant 0 : index
    %c0_0 = arith.constant 0 : index
    %0 = vector.load %arg2[%c0, %c0_0] : memref<16x32xf32, #tpu.memory_space<vmem>>, vector<16x32xf32>
    %c0_1 = arith.constant 0 : index
    %c0_2 = arith.constant 0 : index
    %1 = vector.load %arg3[%c0_1, %c0_2] : memref<32x32xf32, #tpu.memory_space<vmem>>, vector<32x32xf32>
    %cst = arith.constant dense<0.000000e+00> : vector<16x32xf32>
    %2 = tpu.matmul %0, %1, %cst {dimension_numbers = #tpu.dot_dimension_numbers<[1], [0], [0], [1], [0, 0, 1, 1], [], []>} : vector<16x32xf32>, vector<32x32xf32>, vector<16x32xf32> -> vector<16x32xf32>
    %c0_3 = arith.constant 0 : index
    %c0_4 = arith.constant 0 : index
    %3 = vector.load %arg4[%c0_3, %c0_4] : memref<1x32xf32, #tpu.memory_space<vmem>>, vector<1x32xf32>
    %4 = vector.broadcast %3 : vector<1x32xf32> to vector<16x32xf32>
    %5 = arith.addf %2, %4 : vector<16x32xf32>
    %c0_5 = arith.constant 0 : index
    %c0_6 = arith.constant 0 : index
    %6 = vector.load %arg5[%c0_5, %c0_6] : memref<16x32xf32, #tpu.memory_space<vmem>>, vector<16x32xf32>
    tpu.vector_store %arg5[%c0_5, %c0_6], %5 {strides = array<i32>} : memref<16x32xf32, #tpu.memory_space<vmem>>, vector<16x32xf32>,
    return
  }
  func.func @transform_0(%arg0: i32, %arg1: i32) -> (i32, i32) {
    %c0_i32 = arith.constant 0 : i32
    %c0_i32_0 = arith.constant 0 : i32
    return %arg1, %c0_i32 : i32, i32
  }
  func.func @transform_1(%arg0: i32, %arg1: i32) -> (i32, i32) {
    %c0_i32 = arith.constant 0 : i32
    %c0_i32_0 = arith.constant 0 : i32
    return %c0_i32, %arg0 : i32, i32
  }
  func.func @transform_2(%arg0: i32, %arg1: i32) -> (i32, i32) {
    %c0_i32 = arith.constant 0 : i32
    %c0_i32_0 = arith.constant 0 : i32
    return %c0_i32, %arg0 : i32, i32
  }
  func.func @transform_3(%arg0: i32, %arg1: i32) -> (i32, i32) {
    %c0_i32 = arith.constant 0 : i32
    return %arg1, %arg0 : i32, i32
  }
}

</mosaic_0001>

<bundles_post_ra>
// kernel: tpu_custom_call.1
= control target key start
LH: loop header
LB: loop body
LE: loop exit
PB: predicated region body
PF: predicated region fallthrough
CT: control target
= control target key end

     0   :  { %8 = vsyncpa [#allocation3], 0  ;;  %s299_s0 = inlined_call_operand.hbm [shape: f32[16,32], index: 0, kind: input, shape index: {}]   ;;  %s300_s1 = inlined_call_operand.hbm [shape: f32[32,32], index: 1, kind: input, shape index: {}]   ;;  %s301_s2 = inlined_call_operand.vmem [shape: f32[1,32], index: 2, kind: input, shape index: {}]   ;;  %s302_s3 = inlined_call_operand.hbm [shape: f32[16,32], index: 3, kind: output, shape index: {}]  }
   0x1   :  { %9 = vsyncpa [#allocation6], 0 }
   0x2   :  { %10 = vsyncpa [#allocation4], 0  ;;  %s249_s12 = smov [#allocation2]  }
   0x3   :  { %s16_s13 = sshll.u32 %s249_s12, 4  ;;  %s17_s13 = int_to_ptr.vmem [resolvable:$true] %s16_s13 }
   0x4   :  { %s191_s14 = scalar_lea.vmem %s17_s13, 256  ;;  %p196_p1 = scmp.lt.s32.totalorder %s17_s13, %s17_s13 }
   0x5   :  { %p192_p0 = scmp.ne.s32.totalorder %s17_s13, %s191_s14  ;;  %p197_p2 = scmp.lt.s32.totalorder %s191_s14, %s191_s14 }
   0x7   :  { %p198_p3 = por %p197_p2, %p196_p1 }
   0x9   :  { %p199_p4 = pnand %p198_p3, %p192_p0 }
   0xb   :  { %202 = shalt.err (!%p199_p4)
}
   0xc   :  { %s250_s15 = smov 128   ;;  %s251_s16 = smov 8  }
   0xd   :  { %22 = dma.hbm_to_vmem [thread:$0]  %s299_s0, 256, %s17_s13, [#allocation3], %s250_s15, %s250_s15, %s251_s16  }
   0xe   :  { %s252_s19 = smov [#allocation5]  }
   0xf   :  { %s28_s20 = sshll.u32 %s252_s19, 4  ;;  %s29_s20 = int_to_ptr.vmem [resolvable:$true] %s28_s20 }
  0x10   :  { %s211_s21 = scalar_lea.vmem %s29_s20, 512  ;;  %p216_p6 = scmp.lt.s32.totalorder %s29_s20, %s29_s20 }
  0x11   :  { %p212_p5 = scmp.ne.s32.totalorder %s29_s20, %s211_s21  ;;  %p217_p7 = scmp.lt.s32.totalorder %s211_s21, %s211_s21 }
  0x13   :  { %p218_p8 = por %p217_p7, %p216_p6 }
  0x15   :  { %p219_p9 = pnand %p218_p8, %p212_p5 }
  0x17   :  { %222 = shalt.err (!%p219_p9)
}
  0x18   :  { %34 = dma.hbm_to_vmem [thread:$0]  %s300_s1, 512, %s29_s20, [#allocation6], %s250_s15, %s250_s15, %s251_s16  }
  0x19   :  { %243 = dma.done.wait [#allocation3], 256  }
  0x1a   :  { %244 = vsyncadd [#allocation3], 4294967040 }
  0x1b   :  { %245 = dma.done.wait [#allocation6], 512  }
  0x1c   :  { %246 = vsyncadd [#allocation6], 4294966784  ;;  %vm56_vm0 = vcmask 261120   ;;  %v48_v0 = vld [vmem:[#allocation5 + $0x18] sm:$0xff]  ;;  %v47_v1 = vld [vmem:[#allocation5 + $0x10] sm:$0xff]  ;;  %s253_s24 = smov [#allocation7]  }
  0x1d   :  { %167 = vmatprep.subr.mxu0 %v48_v0  ;;  %v43_v2 = vld [vmem:[#allocation2] sm:$0xff]  ;;  %v46_v3 = vld [vmem:[#allocation5 + $0x8] sm:$0xff]  ;;  %v45_v4 = vld [vmem:[#allocation5] sm:$0xff]  ;;  %s145_s25 = sshll.u32 %s253_s24, 4  ;;  %s146_s25 = int_to_ptr.vmem [resolvable:$true] %s145_s25 }
  0x1e   :  { %168 = vmatpush3.msra.mxu0 %v48_v0  ;;  %175 = vmatprep.mubr.msk.f32.mxu0 %vm56_vm0, %v43_v2  ;;  %v44_v5 = vld [vmem:[#allocation2 + $0x8] sm:$0xff]  ;;  %v158_v6 = vld [vmem:[%s301_s2] ss:$0 sm:$0xff]  ;;  %s223_s26 = scalar_lea.vmem %s146_s25, 256  ;;  %p228_p11 = scmp.lt.s32.totalorder %s146_s25, %s146_s25 }
  0x1f   :  { %169 = vmatprep.subr.mxu0 %v47_v1  ;;  %p224_p10 = scmp.ne.s32.totalorder %s146_s25, %s223_s26  ;;  %p229_p12 = scmp.lt.s32.totalorder %s223_s26, %s223_s26 }
  0x20   :  { %170 = vmatpush3.msra.mxu0 %v47_v1 }
  0x21   :  { %171 = vmatprep.subr.mxu0 %v46_v3  ;;  %p230_p13 = por %p229_p12, %p228_p11 }
  0x22   :  { %172 = vmatpush3.msra.mxu0 %v46_v3 }
  0x23   :  { %173 = vmatprep.subr.mxu0 %v45_v4  ;;  %p231_p0 = pnand %p230_p13, %p224_p10 }
  0x24   :  { %174 = vmatpush3.msra.mxu0 %v45_v4 }
  0x25   :  { %176 = vmatmul.mubr.msk.f32.vlgmr.msra.gmra.mxu0 %vm56_vm0, %v44_v5 }
  0xe5   :  { %v177_v7 = vpop.f32.mrf.mxu0 }
  0xe6   :  { %v135_v8 = vadd.f32 %v177_v7, %v158_v6 }
  0xe7   :  { %v129_v9 = vpop.f32.mrf.mxu0 }
  0xe8   :  { %139 = vst.msk [vmem:[#allocation7 + $0x8] sm:$0xff] %vm56_vm0, %v135_v8  ;;  %v130_v10 = vadd.f32 %v158_v6, %v129_v9 }
  0xea   :  { %138 = vst.msk [vmem:[#allocation7] sm:$0xff] %vm56_vm0, %v130_v10 }
  0xeb   :  { %234 = shalt.err (!%p231_p0)
}
  0xec   :  { %151 = dma.vmem_to_hbm [thread:$0]  %s146_s25, 256, %s302_s3, [#allocation4], %s250_s15, %s250_s15, %s251_s16  }
  0xed   :  { %247 = dma.done.wait [#allocation4], 256  }
  0xee   :  { %248 = vsyncadd [#allocation4], 4294967040 }
  0xef   :  { %155 = vsyncpa [#allocation3], 1 }
  0xf0   :  { %156 = vsyncpa [#allocation6], 1 }
  0xf1   :  { %157 = vsyncpa [#allocation4], 1 }

</bundles_post_ra>
